<compile_context>
chip_gen: v7x
topology: tpu7x:2x2x1
jax: 0.10.0
libtpu: 0.0.40
codegen_flags: <defaults>
</compile_context>

<pallas_src>
import jax
import jax.numpy as jnp
from jax.experimental import pallas as pl
from jax.experimental.pallas import tpu as pltpu


def _mypool_kernel(wT_ref, b_ref, x_ref, o_ref):
    # wT_ref: (C, C)  = weight.T   (resident across the grid)
    # b_ref : (C, 1)               (resident across the grid)
    # x_ref : (C, T)  channel-major activation tile (T = lane tile of H*W)
    # o_ref : (C, T)
    acc = jnp.dot(wT_ref[...], x_ref[...], preferred_element_type=jnp.float32)
    o_ref[...] = (acc + b_ref[...]).astype(o_ref.dtype)


def _pick_lane_tile(hw, c, itemsize, vmem_budget=8 * 1024 * 1024):
    """Largest lane tile that divides H*W, is a multiple of 128, and keeps the
    double-buffered input+output blocks within a modest VMEM budget
    (safe for v7x's smaller 64 MiB VMEM as well as v5e/v6e)."""
    if hw % 128 != 0:
        return hw  # full-extent block is always a legal layout
    # 2 (in + out) * 2 (double buffer) * c * t * itemsize <= budget
    cap = max(128, (vmem_budget // (4 * c * itemsize)) // 128 * 128)
    for cand in (4096, 2048, 1024, 512, 256):
        if cand <= hw and cand <= cap and hw % cand == 0:
            return cand
    return 128


def mypool_forward(x_nchw, weight, bias):
    """Pallas implementation of mypool.forward.

    x_nchw : (B, C, H, W)  -- C must equal output_features
    weight : (C, C)
    bias   : (C,)
    returns (B, C, H, W)
    """
    B, C, H, W = x_nchw.shape
    HW = H * W
    x3d = x_nchw.reshape(B, C, HW)          # metadata-only reshape, no copy
    wT = weight.T                            # tiny (C, C) transpose
    b2d = bias.reshape(C, 1)                 # column broadcast along lanes

    itemsize = jnp.dtype(x3d.dtype).itemsize
    t_hw = _pick_lane_tile(HW, C, itemsize)
    grid = (B, HW // t_hw)

    cost = pl.CostEstimate(
        flops=2 * B * HW * C * C,
        transcendentals=0,
        bytes_accessed=2 * B * C * HW * itemsize + C * C * itemsize + C * itemsize,
    )

    out3d = pl.pallas_call(
        _mypool_kernel,
        out_shape=jax.ShapeDtypeStruct((B, C, HW), x3d.dtype),
        grid_spec=pltpu.PrefetchScalarGridSpec(
            num_scalar_prefetch=0,
            grid=grid,
            in_specs=[
                pl.BlockSpec((C, C), lambda b, j: (0, 0)),        # weight.T (resident)
                pl.BlockSpec((C, 1), lambda b, j: (0, 0)),        # bias     (resident)
                pl.BlockSpec((None, C, t_hw), lambda b, j: (b, 0, j)),  # x tile
            ],
            out_specs=pl.BlockSpec((None, C, t_hw), lambda b, j: (b, 0, j)),
        ),
        compiler_params=pltpu.CompilerParams(
            dimension_semantics=("parallel", "parallel"),
        ),
        cost_estimate=cost,
    )(wT, b2d, x3d)

    return out3d.reshape(B, C, H, W)


if __name__ == "__main__":
    key = jax.random.PRNGKey(0)
    k_x, k_w, k_b = jax.random.split(key, 3)

    # small shapes consistent with the module: channels == output_features
    B, C, H, W = 2, 32, 16, 16
    output_features = C

    x = jax.random.normal(k_x, (B, C, H, W), dtype=jnp.float32)
    # deterministic init mirroring uniform_(-0.1, 0.1)
    weight = jax.random.uniform(
        k_w, (output_features, output_features), dtype=jnp.float32,
        minval=-0.1, maxval=0.1)
    bias = jax.random.uniform(
        k_b, (output_features,), dtype=jnp.float32, minval=-0.1, maxval=0.1)

    out = mypool_forward(x, weight, bias)
    out = jax.block_until_ready(out)

    # reference check in plain JAX (identical math to the PyTorch module)
    ref = jnp.einsum("bchw,co->bohw", x, weight) + bias[None, :, None, None]
    assert out.shape == (B, C, H, W)
    assert jnp.allclose(out, ref, atol=1e-5, rtol=1e-5)

    print("KERNEL_OK")
</pallas_src>

<mosaic_0001>
module attributes {stable_mosaic.version = 11 : i64} {
  func.func @_mypool_kernel(%arg0: i32, %arg1: i32, %arg2: memref<32x32xf32, #tpu.memory_space<vmem>>, %arg3: memref<32x1xf32, #tpu.memory_space<vmem>>, %arg4: memref<1x32x256xf32, #tpu.memory_space<vmem>>, %arg5: memref<1x32x256xf32, #tpu.memory_space<vmem>>) attributes {dimension_semantics = [#tpu.dimension_semantics<parallel>, #tpu.dimension_semantics<parallel>], iteration_bounds = array<i64: 2, 1>, scalar_prefetch = 0 : i64, scratch_operands = 0 : i64, tpu.core_type = #tpu.core_type<tc>, window_params = [{pipeline_mode = #tpu.pipeline_mode<synchronous>, transform_indices = @transform_0, window_bounds = array<i64: 32, 32>}, {pipeline_mode = #tpu.pipeline_mode<synchronous>, transform_indices = @transform_1, window_bounds = array<i64: 32, 1>}, {transform_indices = @transform_2, window_bounds = array<i64: 1, 32, 256>}, {transform_indices = @transform_3, window_bounds = array<i64: 1, 32, 256>}]} {
    %c0 = arith.constant 0 : index
    %c0_0 = arith.constant 0 : index
    %0 = vector.load %arg2[%c0, %c0_0] : memref<32x32xf32, #tpu.memory_space<vmem>>, vector<32x32xf32>
    %c0_1 = arith.constant 0 : index
    %c0_2 = arith.constant 0 : index
    %c0_3 = arith.constant 0 : index
    %1 = vector.load %arg4[%c0_1, %c0_2, %c0_3] : memref<1x32x256xf32, #tpu.memory_space<vmem>>, vector<1x32x256xf32>
    %2 = vector.shape_cast %1 : vector<1x32x256xf32> to vector<32x256xf32>
    %cst = arith.constant dense<0.000000e+00> : vector<32x256xf32>
    %3 = tpu.matmul %0, %2, %cst {dimension_numbers = #tpu.dot_dimension_numbers<[1], [0], [0], [1], [0, 0, 1, 1], [], []>} : vector<32x32xf32>, vector<32x256xf32>, vector<32x256xf32> -> vector<32x256xf32>
    %c0_4 = arith.constant 0 : index
    %c0_5 = arith.constant 0 : index
    %4 = vector.load %arg3[%c0_4, %c0_5] : memref<32x1xf32, #tpu.memory_space<vmem>>, vector<32x1xf32>
    %5 = vector.broadcast %4 : vector<32x1xf32> to vector<32x256xf32>
    %6 = arith.addf %3, %5 : vector<32x256xf32>
    %c0_6 = arith.constant 0 : index
    %c0_7 = arith.constant 0 : index
    %c0_8 = arith.constant 0 : index
    %7 = vector.load %arg5[%c0_6, %c0_7, %c0_8] : memref<1x32x256xf32, #tpu.memory_space<vmem>>, vector<1x32x256xf32>
    %8 = vector.shape_cast %7 : vector<1x32x256xf32> to vector<32x256xf32>
    %9 = vector.shape_cast %6 : vector<32x256xf32> to vector<1x32x256xf32>
    tpu.vector_store %arg5[%c0_6, %c0_7, %c0_8], %9 {strides = array<i32>} : memref<1x32x256xf32, #tpu.memory_space<vmem>>, vector<1x32x256xf32>,
    return
  }
  func.func @transform_0(%arg0: i32, %arg1: i32) -> (i32, i32) {
    %c0_i32 = arith.constant 0 : i32
    %c0_i32_0 = arith.constant 0 : i32
    %c0_i32_1 = arith.constant 0 : i32
    return %c0_i32, %c0_i32_0 : i32, i32
  }
  func.func @transform_1(%arg0: i32, %arg1: i32) -> (i32, i32) {
    %c0_i32 = arith.constant 0 : i32
    %c0_i32_0 = arith.constant 0 : i32
    %c0_i32_1 = arith.constant 0 : i32
    return %c0_i32, %c0_i32_0 : i32, i32
  }
  func.func @transform_2(%arg0: i32, %arg1: i32) -> (i32, i32, i32) {
    %c0_i32 = arith.constant 0 : i32
    %c0_i32_0 = arith.constant 0 : i32
    return %arg0, %c0_i32, %arg1 : i32, i32, i32
  }
  func.func @transform_3(%arg0: i32, %arg1: i32) -> (i32, i32, i32) {
    %c0_i32 = arith.constant 0 : i32
    %c0_i32_0 = arith.constant 0 : i32
    return %arg0, %c0_i32, %arg1 : i32, i32, i32
  }
}

</mosaic_0001>

<bundles_post_ra>
// kernel: tpu_custom_call.1
= control target key start
LH: loop header
LB: loop body
LE: loop exit
PB: predicated region body
PF: predicated region fallthrough
CT: control target
= control target key end

     0   :  { %8 = vsyncpa [#allocation3], 0  ;;  %s906_s0 = inlined_call_operand.vmem [shape: f32[32,32], index: 0, kind: input, shape index: {}]   ;;  %s907_s1 = inlined_call_operand.vmem [shape: f32[32,1], index: 1, kind: input, shape index: {}]   ;;  %s908_s2 = inlined_call_operand.hbm [shape: f32[2,32,256], index: 2, kind: input, shape index: {}]   ;;  %s909_s3 = inlined_call_operand.hbm [shape: f32[2,32,256], index: 3, kind: output, shape index: {}]  }
   0x1   :  { %10 = vsyncpa [#allocation3 + $0x1], 0 }
   0x2   :  { %11 = vsyncpa [#allocation4], 0 }
   0x3   :  { %13 = vsyncpa [#allocation4 + $0x1], 0  ;;  %s703_s12 = smov 0   ;;  %s705_s13 = smov 0  }
   0x4   :  { %s707_s14 = smov 0   ;;  %s709_s15 = smov 0  }
   0x5   :  { %s711_s16 = smov 0   ;;  %s713_s17 = smov 0  }
   0x6 LB: > { %s458_s18 = sadd.s32 4294967295, %s673_s17   ;;  %s459_s19 = sadd.s32 4294967294, %s673_s17   ;;  %s673_s17 = sphi %s713_s17, %s19_s17   ;;  %s669_s16 = sphi %s711_s16, %s924_s16   ;;  %s665_s15 = sphi %s709_s15, %s923_s15   ;;  %s661_s14 = sphi %s707_s14, %s922_s14   ;;  %s657_s13 = sphi %s705_s13, %s921_s13   ;;  %s653_s12 = sphi %s703_s12, %s920_s12  }
   0x7   : > { %s31_s20 = sadd.s32 1, %s669_s16  ;;  %s82_s21 = sadd.s32 1, %s661_s14 }
   0x8   : > { %p33_p0 = scmp.ge.s32.totalorder %s31_s20, 2  ;;  %p89_p1 = scmp.ne.s32.totalorder %s661_s14, %s657_s13 }
   0x9   : > { %p90_p2 = scmp.eq.s32.totalorder %s673_s17, 0  ;;  %p95_p3 = scmp.ne.s32.totalorder %s657_s13, %s653_s12 }
   0xa   : > { %s926_s20 = smov (%p33_p0, %s31_s20), 0  ;;  %p96_p5 = scmp.eq.s32.totalorder %s458_s18, 0 }
   0xb   : > { %p744_p4 = por %p90_p2, %p89_p1  ;;  %s77_s23 = ssub.s32 %s669_s16, %s926_s20 }
   0xc   : > { %p121_p6 = scmp.eq.s32.totalorder %s458_s18, 1  ;;  %p80_p7 = scmp.eq.s32.totalorder %s77_s23, 0 }
   0xd   : > { %p750_p8 = por %p96_p5, %p95_p3  ;;  %p127_p10 = scmp.eq.s32.totalorder %s459_s19, 1 }
   0xe   : > { %p754_p9 = por %p121_p6, %p89_p1  ;;  %p503_p13 = scmp.lt.s32.totalorder %s673_s17, 2 }
   0xf   : > { %s759_s26 = scalar_select %p80_p7, %s661_s14, %s82_s21  }
  0x10   : > { %s913_s25 = scalar_select %p754_p9, 1, 0 }
  0x11   : > { %p761_p11 = por %p127_p10, %p95_p3  ;;  %s153_s28 = sand.u32 1, %s661_s14  }
  0x12   : > { %s462_s29 = sshll.u32 %s153_s28, 6  ;;  %s477_s30 = sshll.u32 %s669_s16, 10 }
  0x13   : > { %s914_s27 = scalar_select %p761_p11, 1, 0 }
  0x14   : > { %s772_s6 = scalar_lea.hbm %s908_s2, %s477_s30  ;;  %s157_s7 = scalar_lea.vmem [#allocation2], %s462_s29 }
  0x15   : > { %s166_s8 = sshll.u32 %s157_s7, 4  ;;  %p778_p0 = pnand %p503_p13, %p744_p4  ;;  %s774_s8 = int_to_ptr.vmem [resolvable:$true] %s166_s8 }
  0x16   : > { %s783_s10 = scalar_lea.sflag [#allocation3], %s153_s28  ;;  %s561_s11 = scalar_lea.hbm %s772_s6, 1024 }
  0x17   : > { %p562_p2 = scmp.ne.s32.totalorder %s772_s6, %s561_s11  ;;  %p563_p3 = pneg %p778_p0 }
  0x18   : > { %s566_s21 = scalar_lea.hbm %s908_s2, 2048  ;;  %p567_p4 = scmp.lt.u32.totalorder %s772_s6, %s908_s2 }
  0x19   : > { %p564_p5 = pnand %p563_p3, %p562_p2  ;;  %p568_p7 = scmp.lt.u32.totalorder %s566_s21, %s561_s11 }
  0x1a   : > { %p570_p13 = scmp.lt.u32.totalorder %s561_s11, %s772_s6 }
  0x1b   : > { %p565_p6 = pneg %p564_p5  ;;  %p569_p10 = por %p568_p7, %p567_p4 }
  0x1d   : > { %p571_p12 = por %p570_p13, %p569_p10 }
  0x1f   : > { %p572_p1 = pnand %p571_p12, %p565_p6 }
  0x21   : > { %575 = shalt.err (!%p572_p1)
}
  0x22   : > { %s576_s28 = scalar_lea.vmem %s774_s8, 1024  ;;  %s675_s29 = smov [#allocation2]  }
  0x23   : > { %p577_p2 = scmp.ne.s32.totalorder %s774_s8, %s576_s28  ;;  %s581_s30 = sshll.u32 %s675_s29, 4  ;;  %s582_s30 = int_to_ptr.vmem [resolvable:$false] %s581_s30 }
  0x24   : > { %s583_s4 = scalar_lea.vmem %s582_s30, 2048  ;;  %p584_p9 = scmp.lt.s32.totalorder %s774_s8, %s582_s30 }
  0x25   : > { %p579_p5 = pnand %p577_p2, %p563_p3  ;;  %p585_p4 = scmp.lt.s32.totalorder %s583_s4, %s576_s28 }
  0x27   : > { %p580_p11 = pneg %p579_p5  ;;  %p586_p7 = por %p585_p4, %p584_p9 }
  0x29   : > { %p587_p10 = pnand %p586_p7, %p580_p11 }
  0x2b   : > { %590 = shalt.err (!%p587_p10)
}
  0x2c   : > { %s676_s5 = smov 256   ;;  %s677_s7 = smov 16  }
  0x2d   : > { %498 = dma.hbm_to_vmem [thread:$0]  (!%p778_p0), %s772_s6, 1024, %s774_s8, %s783_s10, %s676_s5, %s676_s5, %s677_s7  }
  0x2e   : > { %p174_p12 = scmp.lt.s32.totalorder %s673_s17, 3  ;;  %p916_p1 = scmp.ge.s32.totalorder %s673_s17, 1 }
  0x30   : > { %p175_p3 = pnand %p916_p1, %p174_p12 }
  0x31   : > { %s815_s11 = sand.u32 (!%p175_p3), 1, %s657_s13  }
  0x32   : > { %178 = sbr.rel (%p175_p3) target bundleno = 303 (0x12f), region = 32  ;;  %s466_s18 = sshll.u32 (!%p175_p3), %s815_s11, 6 }
  0x33   : > { %s181_s19 = scalar_lea.sflag (!%p175_p3), [#allocation3], %s815_s11  ;;  %s184_s21 = scalar_lea.vmem (!%p175_p3), [#allocation2], %s466_s18 }
  0x39   : > { %644 = dma.done.wait (%p750_p8), %s181_s19, 1024  }
  0x3a   : > { %646 = vsyncadd (%p750_p8), %s181_s19, 4294966272  ;;  %v678_v0 = vmov 0.0   ;;  %v679_v1 = vmov 0   ;;  %v214_v2 = vld [vmem:[%s184_s21 + $0x8] sm:$0xff]  ;;  %v216_v3 = vld [vmem:[%s184_s21 + $0x18] sm:$0xff]  ;;  %vm245_vm0 = vcmask 261120  }
  0x3b   : > { %322 = vmatprep.mubr.f32.mxu0 %v678_v0  ;;  %334 = vmatprep.mubr.f32.mxu1 %v678_v0  ;;  %v213_v4 = vld [vmem:[%s184_s21] sm:$0xff]  ;;  %v479_v5 = vpack.c.bf16 %v216_v3, %v214_v2  ;;  %v215_v6 = vld [vmem:[%s184_s21 + $0x10] sm:$0xff]  ;;  %v218_v7 = vld [vmem:[%s184_s21 + $0x28] sm:$0xff]  ;;  %s206_s6 = scalar_lea.vmem [#allocation5], %s466_s18  ;;  %s478_s9 = sshll.u32 %s665_s15, 10 }
  0x3c   : > { %560 = vset.pattern.permute.xlu1 %v679_v1  ;;  %559 = vset.pattern.permute.xlu0 %v679_v1  ;;  %v220_v8 = vld [vmem:[%s184_s21 + $0x38] sm:$0xff]  ;;  %v481_v9 = vpack.c.bf16 %v215_v6, %v213_v4  ;;  %v217_v11 = vld [vmem:[%s184_s21 + $0x20] sm:$0xff]  ;;  %v219_v12 = vld [vmem:[%s184_s21 + $0x30] sm:$0xff]  ;;  %s371_s8 = sshll.u32 %s206_s6, 4  ;;  %s857_s10 = scalar_lea.hbm %s909_s3, %s478_s9  ;;  %s852_s8 = int_to_ptr.vmem [resolvable:$true] %s371_s8 }
  0x3d   : > { %v483_v10 = vpack.c.bf16 %v220_v8, %v218_v7  ;;  %480 = vmatprep.subr.bf16.mxu0 %v479_v5  ;;  %487 = vmatprep.subr.bf16.mxu1 %v479_v5  ;;  %v485_v13 = vpack.c.bf16 %v219_v12, %v217_v11  ;;  %v223_v14 = vld [vmem:[%s907_s1 + $0x10] sm:$0xff]  ;;  %v221_v15 = vld [vmem:[%s907_s1] sm:$0xff]  ;;  %v224_v16 = vld [vmem:[%s907_s1 + $0x18] sm:$0xff]  ;;  %s356_s22 = scalar_lea.sflag [#allocation4], %s815_s11  ;;  %s591_s23 = scalar_lea.vmem %s852_s8, 1024 }
  0x3e   : > { %482 = vmatpush1.bf16.msra.mxu0 %v481_v9  ;;  %489 = vmatpush1.bf16.msra.mxu1 %v481_v9  ;;  %v222_v17 = vld [vmem:[%s907_s1 + $0x8] sm:$0xff]  ;;  %v209_v18 = vld [vmem:[%s906_s0] sm:$0xff]  ;;  %v211_v19 = vld [vmem:[%s906_s0 + $0x10] sm:$0xff]  ;;  %p592_p8 = scmp.ne.s32.totalorder %s852_s8, %s591_s23  ;;  %p917_p9 = scmp.ne.s32.totalorder %s913_s25, 0 }
  0x3f   : > { %484 = vmatprep.subr.bf16.mxu0 %v483_v10  ;;  %488 = vmatprep.subr.bf16.mxu1 %v483_v10  ;;  %v210_v20 = vld [vmem:[%s906_s0 + $0x8] sm:$0xff]  ;;  %v212_v21 = vld [vmem:[%s906_s0 + $0x18] sm:$0xff]  ;;  %s680_s28 = smov [#allocation5]  }
  0x40   : > { %237 = vperm.xlu1 %560, %v223_v14   ;;  %227 = vperm.xlu0 %559, %v221_v15   ;;  %p593_p11 = pnand %p592_p8, %p917_p9  ;;  %s595_s29 = sshll.u32 %s680_s28, 4  ;;  %s596_s29 = int_to_ptr.vmem [resolvable:$false] %s595_s29 }
  0x41   : > { %s597_s30 = scalar_lea.vmem %s596_s29, 2048  ;;  %p598_p6 = scmp.lt.s32.totalorder %s852_s8, %s596_s29 }
  0x42   : > { %486 = vmatpush1.bf16.msra.mxu0 %v485_v13  ;;  %490 = vmatpush1.bf16.msra.mxu1 %v485_v13  ;;  %p594_p0 = pneg %p593_p11  ;;  %p599_p13 = scmp.lt.s32.totalorder %s597_s30, %s591_s23 }
  0x44   : > { %242 = vperm.xlu1 %560, %v224_v16   ;;  %232 = vperm.xlu0 %559, %v222_v17   ;;  %p600_p2 = por %p599_p13, %p598_p6 }
  0x45   : > { %468 = vmatmul.mubr.msk.f32.vlgmr.msra.gmra.mrb[0].mxu0 %vm245_vm0, %v209_v18  ;;  %470 = vmatmul.mubr.msk.f32.vlgmr.msra.gmra.mrb[0].mxu1 %vm245_vm0, %v211_v19 }
  0x46   : > { %328 = vmatprep.mubr.f32.mxu0 %v678_v0  ;;  %340 = vmatprep.mubr.f32.mxu1 %v678_v0  ;;  %p601_p5 = pnand %p600_p2, %p594_p0 }
  0x49   : > { %469 = vmatmul.mubr.msk.f32.gmra.mrb[2].mxu0 %vm245_vm0, %v210_v20  ;;  %471 = vmatmul.mubr.msk.f32.gmra.mrb[2].mxu1 %vm245_vm0, %v212_v21 }
  0xbf   : > { %v238_v22 = vpop.permute.xlu1 %237  ;;  %v228_v23 = vpop.permute.xlu0 %227 }
  0xc3   : > { %v243_v32 = vpop.permute.xlu1 %242  ;;  %v233_v33 = vpop.permute.xlu0 %232 }
 0x118   : > { %v324_v24 = vpop.f32.mrb[0].mxu0  ;;  %v336_v25 = vpop.f32.mrb[0].mxu1 }
 0x119   : > { %v325_v26 = vadd.f32 %v324_v24, %v228_v23  ;;  %v337_v27 = vadd.f32 %v336_v25, %v238_v22  ;;  %v326_v28 = vpop.f32.mrb[1].mxu0  ;;  %v338_v29 = vpop.f32.mrb[1].mxu1 }
 0x11a   : > { %v327_v30 = vadd.f32 %v326_v28, %v228_v23  ;;  %v339_v31 = vadd.f32 %v338_v29, %v238_v22 }
 0x11b   : > { %347 = vst [vmem:[%s206_s6] sm:$0xff] %v325_v26  ;;  %351 = vst [vmem:[%s206_s6 + $0x20] sm:$0xff] %v337_v27 }
 0x11c   : > { %348 = vst [vmem:[%s206_s6 + $0x8] sm:$0xff] %v327_v30  ;;  %352 = vst [vmem:[%s206_s6 + $0x28] sm:$0xff] %v339_v31  ;;  %v330_v34 = vpop.f32.mrb[2].mxu0  ;;  %v342_v35 = vpop.f32.mrb[2].mxu1 }
 0x11d   : > { %v331_v36 = vadd.f32 %v330_v34, %v233_v33  ;;  %v343_v37 = vadd.f32 %v342_v35, %v243_v32  ;;  %v332_v38 = vpop.f32.mrb[3].mxu0  ;;  %v344_v39 = vpop.f32.mrb[3].mxu1 }
 0x11e   : > { %v333_v40 = vadd.f32 %v332_v38, %v233_v33  ;;  %v345_v41 = vadd.f32 %v344_v39, %v243_v32 }
 0x11f   : > { %349 = vst [vmem:[%s206_s6 + $0x10] sm:$0xff] %v331_v36  ;;  %353 = vst [vmem:[%s206_s6 + $0x30] sm:$0xff] %v343_v37 }
 0x120   : > { %350 = vst [vmem:[%s206_s6 + $0x18] sm:$0xff] %v333_v40  ;;  %354 = vst [vmem:[%s206_s6 + $0x38] sm:$0xff] %v345_v41 }
 0x121   : > { %604 = shalt.err (!%p601_p5)
}
 0x122   : > { %s605_s4 = scalar_lea.hbm %s857_s10, 1024  ;;  %s609_s19 = scalar_lea.hbm %s909_s3, 2048 }
 0x123   : > { %p606_p4 = scmp.ne.s32.totalorder %s857_s10, %s605_s4  ;;  %p610_p12 = scmp.lt.u32.totalorder %s857_s10, %s909_s3 }
 0x124   : > { %p611_p1 = scmp.lt.u32.totalorder %s609_s19, %s605_s4  ;;  %p613_p8 = scmp.lt.u32.totalorder %s605_s4, %s857_s10 }
 0x125   : > { %p607_p7 = pnand %p606_p4, %p917_p9 }
 0x126   : > { %p612_p3 = por %p611_p1, %p610_p12 }
 0x127   : > { %p608_p10 = pneg %p607_p7 }
 0x128   : > { %p614_p11 = por %p613_p8, %p612_p3 }
 0x12a   : > { %p615_p0 = pnand %p614_p11, %p608_p10 }
 0x12c   : > { %618 = shalt.err (!%p615_p0)
}
 0x12d   : > { %s681_s6 = smov 256   ;;  %s682_s9 = smov 16  }
 0x12e   : > { %493 = dma.vmem_to_hbm [thread:$0]  (%p917_p9), %s852_s8, 1024, %s857_s10, %s356_s22, %s681_s6, %s681_s6, %s682_s9  }
 0x12f PF: > { %s386_s18 = sand.u32 1, %s653_s12   ;;  %p918_p6 = scmp.ne.s32.totalorder %s914_s27, 0 }
 0x130   : > { %p919_p13 = scmp.ge.s32.totalorder %s673_s17, 2  ;;  %s387_s15 = scalar_lea.sflag [#allocation4], %s386_s18 }
 0x132   : > { %p500_p2 = pnand %p919_p13, %p918_p6 }
 0x134   : > { %648 = dma.done.wait (!%p500_p2), %s387_s15, 1024  }
 0x135   : > { %650 = vsyncadd (!%p500_p2), %s387_s15, 4294966272  ;;  %s19_s17 = sadd.s32 1, %s673_s17   ;;  %s920_s12 = smov %s657_s13 }
 0x136   : > { %p16_p5 = scmp.ge.s32.totalorder %s19_s17, 4   ;;  %s921_s13 = smov %s661_s14 }
 0x137   : > { %s922_s14 = smov %s759_s26  ;;  %s923_s15 = smov %s669_s16 }
 0x138   : > { %s924_s16 = smov %s926_s20  ;;  %18 = sbr.rel (!%p16_p5) target bundleno = 6 (0x6), region = 77 }
 0x13f   :  { %392 = vsyncpa [#allocation3], 1 }
 0x140   :  { %394 = vsyncpa [#allocation3 + $0x1], 1 }
 0x141   :  { %395 = vsyncpa [#allocation4], 1 }
 0x142   :  { %397 = vsyncpa [#allocation4 + $0x1], 1 }

</bundles_post_ra>
